<compile_context>
chip_gen: v7x
topology: tpu7x:2x2x1
jax: 0.10.0
libtpu: 0.0.40
codegen_flags: <defaults>
</compile_context>

<pallas_src>
import functools
import math

import jax
import jax.numpy as jnp
from jax import lax
from jax.experimental import pallas as pl
from jax.experimental.pallas import tpu as pltpu


# ----------------------------------------------------------------------------
# Helpers
# ----------------------------------------------------------------------------
def _eca_k_size(channels, gamma=2, b=1):
    t = int(abs((math.log(channels, 2) + b) / gamma))
    return t if t % 2 else t + 1


def _ceil_div(a, b):
    return -(-a // b)


def _vmem_capacity_bytes():
    """Physical VMEM of the local TPU; conservative (v7x) default if unknown."""
    try:
        info = pltpu.get_tpu_info()
        cap = getattr(info, "vmem_capacity_bytes", None)
        if cap:
            return int(cap)
    except Exception:
        pass
    return 64 << 20


def _gen_params(itemsize):
    """Generation-aware (scoped_vmem_limit, per-step target block bytes,
    max whole-sample block bytes for the fused path)."""
    vmem_cap = _vmem_capacity_bytes()
    if vmem_cap >= 100 << 20:        # v5e / v6e: 128 MiB VMEM
        scoped_limit = 96 << 20
        target_block = 8 << 20
    else:                            # v7x: 64 MiB VMEM (or unknown backend)
        scoped_limit = 48 << 20
        target_block = 4 << 20
    # Fused-step VMEM budget: 2x double-buffered input + 2x double-buffered
    # output + one block-sized f32 temporary (worst case for the pool cast).
    factor = 4 + max(1, 4 // itemsize)
    max_block = (scoped_limit - (2 << 20)) // factor
    return scoped_limit, target_block, max_block


def _conv1d_sigmoid(y, w_ref, K, C):
    """Exact f32 cross-correlation over channels (zero pad, no bias) + sigmoid.

    y: (bN, C) f32 pooled means; w_ref: (1, K) f32 weights in SMEM.
    Kept as shifted-adds on the tiny pooled vector (K in {1,3,5}); it is off
    the HBM critical path of this memory-bound kernel.
    """
    pad = (K - 1) // 2
    if pad > 0:
        zeros = jnp.zeros((y.shape[0], pad), jnp.float32)
        ypad = jnp.concatenate([zeros, y, zeros], axis=1)          # (bN, C + 2*pad)
    else:
        ypad = y
    z = jnp.zeros_like(y)
    for j in range(K):                                             # unrolled, K tiny
        z = z + w_ref[0, j] * ypad[:, j:j + C]
    return jax.nn.sigmoid(z)                                       # (bN, C) f32


# ----------------------------------------------------------------------------
# Kernels
# ----------------------------------------------------------------------------
def _eca_fused_kernel(x_ref, w_ref, o_ref, *, K, inv_hw):
    """Fused path: x_ref is (bN, C, HW) — whole sample(s) per grid step.

    Partial batch blocks (grid = cdiv(N, bN)) need no masking: the gate math
    is row-independent and out-of-bounds output rows are dropped by the masked
    block write-back.
    """
    _, C, _ = x_ref.shape
    # Global average pool over the flattened spatial (lane) axis, f32 accum.
    y = jnp.sum(x_ref[...].astype(jnp.float32), axis=-1) * inv_hw  # (bN, C)
    s = _conv1d_sigmoid(y, w_ref, K, C).astype(x_ref.dtype)        # (bN, C)
    # Re-read the VMEM tile for the rescale (no full f32 copy held live).
    o_ref[...] = (x_ref[...] * s[:, :, None]).astype(o_ref.dtype)


def _eca_gate_kernel(x_ref, w_ref, s_ref, acc_ref, *, K, inv_hw, HW, tS):
    """Two-pass path, pass 1: spatially tiled pool -> conv1d -> sigmoid gates.

    acc_ref is (1, C, 1) so C stays on sublanes in the reduction loop; the one
    sublane->lane relayout happens only in the finalize.  The last (possibly
    ragged) spatial tile is masked in-kernel, so the wrapper never pads x.
    NOTE: s_ref is written only on the final reduction step and relies on
    Pallas' write-back-on-block-index-change semantics for outputs.
    """
    _, C, _ = x_ref.shape
    t = pl.program_id(1)
    last = pl.num_programs(1) - 1

    @pl.when(t == 0)
    def _():
        acc_ref[...] = jnp.zeros_like(acc_ref)

    @pl.when(t < last)
    def _():
        acc_ref[...] += jnp.sum(x_ref[...].astype(jnp.float32), axis=-1,
                                keepdims=True)

    @pl.when(t == last)
    def _():
        lane = lax.broadcasted_iota(jnp.int32, x_ref.shape, 2)
        valid = (t * tS + lane) < HW                               # ragged tail mask
        xt = jnp.where(valid, x_ref[...].astype(jnp.float32), 0.0)
        acc_ref[...] += jnp.sum(xt, axis=-1, keepdims=True)
        y = acc_ref[...].reshape(1, C) * inv_hw                    # (1, C)
        s = _conv1d_sigmoid(y, w_ref, K, C)                        # (1, C)
        s_ref[...] = s[:, :, None]                                 # (1, C, 1)


def _eca_scale_kernel(x_ref, s_ref, o_ref):
    """Two-pass path, pass 2: spatially tiled channel-wise rescale.
    The ragged last spatial tile needs no masking: out-of-bounds output lanes
    are dropped by the block write-back."""
    s = s_ref[...].astype(x_ref.dtype)                              # (1, C, 1)
    o_ref[...] = (x_ref[...] * s).astype(o_ref.dtype)


# ----------------------------------------------------------------------------
# Wrapper
# ----------------------------------------------------------------------------
def eca_forward(x, conv_weight, *, max_block_bytes=None, spatial_tile_bytes=None,
                in_place=False):
    """ECA forward: x (N, C, H, W), conv_weight (1, 1, K) / (1, K) / (K,).

    in_place=True aliases the x input buffer with the output
    (input_output_aliases={0: 0}); only beneficial when x is donated under jit,
    otherwise XLA inserts a defensive copy.
    """
    N, C, H, W = x.shape
    HW = H * W
    itemsize = jnp.dtype(x.dtype).itemsize
    inv_hw = 1.0 / float(HW)

    w2 = jnp.asarray(conv_weight, jnp.float32).reshape(1, -1)       # (1, K) for SMEM
    K = int(w2.shape[1])
    xf = x.reshape(N, C, HW)                                        # lane-dense layout

    scoped_limit, target_block, fused_cap = _gen_params(itemsize)
    if max_block_bytes is None:
        max_block_bytes = fused_cap
    sample_bytes = C * HW * itemsize
    io_alias = {0: 0} if in_place else {}

    if sample_bytes <= max_block_bytes:
        # -------- fused single pass: bN whole samples per grid step --------
        bN = min(_ceil_div(target_block, sample_bytes),
                 max(1, max_block_bytes // sample_bytes),
                 N)
        if N >= 2:
            bN = min(bN, _ceil_div(N, 2))     # >= 2 grid steps (megacore + overlap)
        grid_n = _ceil_div(N, bN)             # partial last batch block is fine
        out = pl.pallas_call(
            functools.partial(_eca_fused_kernel, K=K, inv_hw=inv_hw),
            out_shape=jax.ShapeDtypeStruct((N, C, HW), x.dtype),
            grid=(grid_n,),
            in_specs=[
                pl.BlockSpec((bN, C, HW), lambda n: (n, 0, 0)),
                pl.BlockSpec(memory_space=pltpu.SMEM),
            ],
            out_specs=pl.BlockSpec((bN, C, HW), lambda n: (n, 0, 0)),
            input_output_aliases=io_alias,
            compiler_params=pltpu.CompilerParams(
                dimension_semantics=("parallel",),
                vmem_limit_bytes=scoped_limit,
            ),
        )(xf, w2)
        return out.reshape(N, C, H, W)

    # -------- two-pass path: one sample does not fit the fused block budget --------
    if spatial_tile_bytes is None:
        spatial_tile_bytes = 4 << 20
    # Free 128-multiple tile size (no divisor constraint, no padding).
    tS = max(128, (spatial_tile_bytes // (C * itemsize)) // 128 * 128)
    if tS >= HW:
        tS = HW                               # single, full-extent spatial tile
    nT = _ceil_div(HW, tS)                    # ragged last tile handled in-kernel
    # TODO(synk): if C*128*itemsize alone exceeds the scoped VMEM budget (very
    # large C) this kernel cannot tile further along C and will not fit.

    # pass 1: pooled mean -> 1-D channel conv -> sigmoid gates, shape (N, C, 1)
    gates = pl.pallas_call(
        functools.partial(_eca_gate_kernel, K=K, inv_hw=inv_hw, HW=HW, tS=tS),
        out_shape=jax.ShapeDtypeStruct((N, C, 1), jnp.float32),
        grid=(N, nT),
        in_specs=[
            pl.BlockSpec((1, C, tS), lambda n, t: (n, 0, t)),
            pl.BlockSpec(memory_space=pltpu.SMEM),
        ],
        out_specs=pl.BlockSpec((1, C, 1), lambda n, t: (n, 0, 0)),
        scratch_shapes=[pltpu.VMEM((1, C, 1), jnp.float32)],
        compiler_params=pltpu.CompilerParams(
            dimension_semantics=("parallel", "arbitrary"),
            vmem_limit_bytes=scoped_limit,
        ),
    )(xf, w2)

    # pass 2: spatially tiled rescale, written at the true (N, C, HW) shape
    out = pl.pallas_call(
        _eca_scale_kernel,
        out_shape=jax.ShapeDtypeStruct((N, C, HW), x.dtype),
        grid=(N, nT),
        in_specs=[
            pl.BlockSpec((1, C, tS), lambda n, t: (n, 0, t)),
            pl.BlockSpec((1, C, 1), lambda n, t: (n, 0, 0)),
        ],
        out_specs=pl.BlockSpec((1, C, tS), lambda n, t: (n, 0, t)),
        input_output_aliases=io_alias,
        compiler_params=pltpu.CompilerParams(
            dimension_semantics=("parallel", "parallel"),
            vmem_limit_bytes=scoped_limit,
        ),
    )(xf, gates)
    return out.reshape(N, C, H, W)


# ----------------------------------------------------------------------------
# Plain-JAX reference mirroring the PyTorch forward
# ----------------------------------------------------------------------------
def eca_reference(x, conv_weight):
    N, C, H, W = x.shape
    w = jnp.asarray(conv_weight, jnp.float32).reshape(-1)
    K = w.shape[0]
    pad = (K - 1) // 2
    y = jnp.mean(x.astype(jnp.float32), axis=(2, 3))                # (N, C)
    ypad = jnp.pad(y, ((0, 0), (pad, pad)))
    z = jnp.zeros_like(y)
    for j in range(K):
        z = z + w[j] * ypad[:, j:j + C]
    s = jax.nn.sigmoid(z).astype(x.dtype)                           # (N, C)
    return (x * s[:, :, None, None]).astype(x.dtype)


if __name__ == "__main__":
    key = jax.random.PRNGKey(0)
    k1, k2, k3, kw = jax.random.split(key, 4)

    C = 16
    k_size = _eca_k_size(C)            # C=16 -> k_size = 3 (as in the PyTorch __init__)
    # Deterministic synthetic Conv1d weight in PyTorch layout (1, 1, k).
    conv_weight = jax.random.normal(kw, (1, 1, k_size), dtype=jnp.float32) * 0.5

    # 1) fused path, even batch
    x1 = jax.random.normal(k1, (2, C, 16, 16), dtype=jnp.float32)
    out1 = jax.block_until_ready(eca_forward(x1, conv_weight))
    assert out1.shape == x1.shape
    assert jnp.allclose(out1, eca_reference(x1, conv_weight), atol=1e-5, rtol=1e-5), \
        "fused path mismatch vs reference"

    # 2) fused path with a partial last batch block (N not divisible by bN)
    x2 = jax.random.normal(k2, (3, C, 16, 16), dtype=jnp.float32)
    out2 = jax.block_until_ready(eca_forward(x2, conv_weight))
    assert jnp.allclose(out2, eca_reference(x2, conv_weight), atol=1e-5, rtol=1e-5), \
        "fused partial-batch mismatch vs reference"

    # 3) forced two-pass path with a ragged (non-128-multiple) spatial extent and
    #    small spatial tiles, exercising the in-kernel tail masking (no padding).
    x3 = jax.random.normal(k3, (2, C, 13, 13), dtype=jnp.float32)
    out3 = jax.block_until_ready(
        eca_forward(x3, conv_weight,
                    max_block_bytes=8 * 1024,
                    spatial_tile_bytes=C * 128 * 4))
    assert jnp.allclose(out3, eca_reference(x3, conv_weight), atol=1e-5, rtol=1e-5), \
        "two-pass path mismatch vs reference"

    print("KERNEL_OK")
</pallas_src>

<mosaic_0001>
module attributes {stable_mosaic.version = 11 : i64} {
  func.func @_eca_fused_kernel(%arg0: i32, %arg1: memref<1x16x256xf32, #tpu.memory_space<vmem>>, %arg2: memref<1x3xf32, #tpu.memory_space<smem>>, %arg3: memref<1x16x256xf32, #tpu.memory_space<vmem>>) attributes {dimension_semantics = [#tpu.dimension_semantics<parallel>], iteration_bounds = array<i64: 2>, scalar_prefetch = 0 : i64, scratch_operands = 0 : i64, tpu.core_type = #tpu.core_type<tc>, window_params = [{transform_indices = @transform_0, window_bounds = array<i64: 1, 16, 256>}, {transform_indices = @transform_1, window_bounds = array<i64: 1, 3>}, {transform_indices = @transform_2, window_bounds = array<i64: 1, 16, 256>}]} {
    %c0 = arith.constant 0 : index
    %c0_0 = arith.constant 0 : index
    %c0_1 = arith.constant 0 : index
    %0 = vector.load %arg1[%c0, %c0_0, %c0_1] : memref<1x16x256xf32, #tpu.memory_space<vmem>>, vector<1x16x256xf32>
    %cst = arith.constant dense<0.000000e+00> : vector<1x16xf32>
    %1 = vector.multi_reduction <add>, %0, %cst [2] : vector<1x16x256xf32> to vector<1x16xf32>
    %cst_2 = arith.constant 3.906250e-03 : f32
    %2 = vector.broadcast %cst_2 : f32 to vector<1x16xf32>
    %3 = arith.mulf %1, %2 : vector<1x16xf32>
    %cst_3 = arith.constant 0.000000e+00 : f32
    %4 = vector.broadcast %cst_3 : f32 to vector<1x1xf32>
    %5 = tpu.concatenate %4, %3, %4 in 1 : vector<1x1xf32>, vector<1x16xf32>, vector<1x1xf32> -> vector<1x18xf32>
    %cst_4 = arith.constant 0.000000e+00 : f32
    %6 = vector.broadcast %cst_4 : f32 to vector<1x16xf32>
    %c0_5 = arith.constant 0 : index
    %c0_6 = arith.constant 0 : index
    %7 = memref.load %arg2[%c0_5, %c0_6] : memref<1x3xf32, #tpu.memory_space<smem>>
    %8 = vector.extract_strided_slice %5 {offsets = [0, 0], sizes = [1, 16], strides = [1, 1]} : vector<1x18xf32> to vector<1x16xf32>
    %9 = vector.broadcast %7 : f32 to vector<1x16xf32>
    %10 = arith.mulf %9, %8 : vector<1x16xf32>
    %11 = arith.addf %6, %10 : vector<1x16xf32>
    %c0_7 = arith.constant 0 : index
    %c1 = arith.constant 1 : index
    %12 = memref.load %arg2[%c0_7, %c1] : memref<1x3xf32, #tpu.memory_space<smem>>
    %13 = vector.extract_strided_slice %5 {offsets = [0, 1], sizes = [1, 16], strides = [1, 1]} : vector<1x18xf32> to vector<1x16xf32>
    %14 = vector.broadcast %12 : f32 to vector<1x16xf32>
    %15 = arith.mulf %14, %13 : vector<1x16xf32>
    %16 = arith.addf %11, %15 : vector<1x16xf32>
    %c0_8 = arith.constant 0 : index
    %c2 = arith.constant 2 : index
    %17 = memref.load %arg2[%c0_8, %c2] : memref<1x3xf32, #tpu.memory_space<smem>>
    %18 = vector.extract_strided_slice %5 {offsets = [0, 2], sizes = [1, 16], strides = [1, 1]} : vector<1x18xf32> to vector<1x16xf32>
    %19 = vector.broadcast %17 : f32 to vector<1x16xf32>
    %20 = arith.mulf %19, %18 : vector<1x16xf32>
    %21 = arith.addf %16, %20 : vector<1x16xf32>
    %22 = arith.negf %21 : vector<1x16xf32>
    %23 = math.exp %22 : vector<1x16xf32>
    %cst_9 = arith.constant 1.000000e+00 : f32
    %24 = vector.broadcast %cst_9 : f32 to vector<1x16xf32>
    %25 = arith.addf %24, %23 : vector<1x16xf32>
    %26 = arith.divf %24, %25 : vector<1x16xf32>
    %c0_10 = arith.constant 0 : index
    %c0_11 = arith.constant 0 : index
    %c0_12 = arith.constant 0 : index
    %27 = vector.load %arg1[%c0_10, %c0_11, %c0_12] : memref<1x16x256xf32, #tpu.memory_space<vmem>>, vector<1x16x256xf32>
    %28 = vector.shape_cast %26 : vector<1x16xf32> to vector<1x16x1xf32>
    %29 = vector.broadcast %28 : vector<1x16x1xf32> to vector<1x16x256xf32>
    %30 = arith.mulf %27, %29 : vector<1x16x256xf32>
    %c0_13 = arith.constant 0 : index
    %c0_14 = arith.constant 0 : index
    %c0_15 = arith.constant 0 : index
    %31 = vector.load %arg3[%c0_13, %c0_14, %c0_15] : memref<1x16x256xf32, #tpu.memory_space<vmem>>, vector<1x16x256xf32>
    tpu.vector_store %arg3[%c0_13, %c0_14, %c0_15], %30 {strides = array<i32>} : memref<1x16x256xf32, #tpu.memory_space<vmem>>, vector<1x16x256xf32>,
    return
  }
  func.func @transform_0(%arg0: i32) -> (i32, i32, i32) {
    %c0_i32 = arith.constant 0 : i32
    %c0_i32_0 = arith.constant 0 : i32
    %c0_i32_1 = arith.constant 0 : i32
    return %arg0, %c0_i32, %c0_i32_0 : i32, i32, i32
  }
  func.func @transform_1(%arg0: i32) -> (i32, i32) {
    %c0_i32 = arith.constant 0 : i32
    %c0_i32_0 = arith.constant 0 : i32
    %c0_i32_1 = arith.constant 0 : i32
    return %c0_i32, %c0_i32_0 : i32, i32
  }
  func.func @transform_2(%arg0: i32) -> (i32, i32, i32) {
    %c0_i32 = arith.constant 0 : i32
    %c0_i32_0 = arith.constant 0 : i32
    %c0_i32_1 = arith.constant 0 : i32
    return %arg0, %c0_i32, %c0_i32_0 : i32, i32, i32
  }
}

</mosaic_0001>

<bundles_post_ra>
// kernel: tpu_custom_call.1
= control target key start
LH: loop header
LB: loop body
LE: loop exit
PB: predicated region body
PF: predicated region fallthrough
CT: control target
= control target key end

     0   :  { %7 = vsyncpa [#allocation3], 0  ;;  %s783_s0 = inlined_call_operand.hbm [shape: f32[2,16,256], index: 0, kind: input, shape index: {}]   ;;  %s784_s1 = inlined_call_operand.vmem [shape: f32[1,3], index: 1, kind: input, shape index: {}]   ;;  %s785_s2 = inlined_call_operand.hbm [shape: f32[2,16,256], index: 2, kind: output, shape index: {}]  }
   0x1   :  { %9 = vsyncpa [#allocation3 + $0x1], 0 }
   0x2   :  { %10 = vsyncpa [#allocation5], 0 }
   0x3   :  { %11 = vsyncpa [#allocation4], 0 }
   0x4   :  { %13 = vsyncpa [#allocation4 + $0x1], 0  ;;  %s582_s9 = smov 0   ;;  %s584_s10 = smov 0  }
   0x5   :  { %s586_s11 = smov 0   ;;  %s588_s12 = smov 0  }
   0x6 LB: > { %s603_s13 = sadd.s32 4294967295, %s556_s12   ;;  %s353_s14 = sadd.s32 4294967294, %s556_s12   ;;  %s556_s12 = sphi %s588_s12, %s805_s12   ;;  %s552_s11 = sphi %s586_s11, %s804_s11   ;;  %s548_s10 = sphi %s584_s10, %s803_s10   ;;  %s544_s9 = sphi %s582_s9, %s802_s9  }
   0x7   : > { %s607_s15 = sadd.s32 1, %s556_s12   ;;  %s26_s16 = sadd.s32 1, %s552_s11 }
   0x8   : > { %s23_s17 = ssub.s32 %s556_s12, %s607_s15  ;;  %p33_p0 = scmp.ne.s32.totalorder %s552_s11, %s548_s10 }
   0x9   : > { %p24_p1 = scmp.eq.s32.totalorder %s23_s17, 0  ;;  %p34_p2 = scmp.eq.s32.totalorder %s556_s12, 0 }
   0xa   : > { %p39_p3 = scmp.ne.s32.totalorder %s548_s10, %s544_s9  ;;  %p787_p4 = scmp.eq.s32.totalorder %s603_s13, 0 }
   0xb   : > { %s619_s18 = scalar_select %p24_p1, %s552_s11, %s26_s16  }
   0xc   : > { %p621_p5 = por %p34_p2, %p33_p0  ;;  %p627_p6 = por %p787_p4, %p39_p3 }
   0xd   : > { %p84_p7 = scmp.eq.s32.totalorder %s603_s13, 1  ;;  %p90_p8 = scmp.eq.s32.totalorder %s353_s14, 1 }
   0xe   : > { %s790_s20 = scalar_select %p627_p6, 1, 0 }
   0xf   : > { %p354_p9 = scmp.ge.s32.totalorder %s556_s12, 1  ;;  %p97_p10 = scmp.lt.s32.totalorder %s556_s12, 3 }
  0x10   : > { %p634_p11 = por %p84_p7, %p33_p0  ;;  %p638_p12 = por %p90_p8, %p39_p3 }
  0x11   : > { %p642_p13 = pnand %p354_p9, %p97_p10  ;;  %s110_s26 = sshll.u32 %s784_s1, 4  ;;  %s111_s26 = int_to_ptr.vmem [resolvable:$true] %s110_s26 }
  0x12   : > { %s791_s21 = scalar_select %p634_p11, 1, 0 }
  0x13   : > { %s792_s22 = scalar_select %p638_p12, 1, 0 }
  0x14   : > { %p382_p1 = pneg %p642_p13  ;;  %p395_p2 = scmp.lt.s32.totalorder %s556_s12, 2 }
  0x15   : > { %s121_s28 = sand.u32 1, %s552_s11   ;;  %s441_s3 = scalar_lea.vmem %s111_s26, 16 }
  0x16   : > { %p655_p7 = pnand %p382_p1, %p787_p4  ;;  %p662_p3 = pnand %p395_p2, %p621_p5 }
  0x17   : > { %s357_s30 = sshll.u32 %s121_s28, 5  ;;  %p442_p8 = scmp.ne.s32.totalorder %s111_s26, %s441_s3 }
  0x18   : > { %p443_p9 = pneg %p655_p7  ;;  %p449_p12 = scmp.lt.s32.totalorder %s111_s26, %s111_s26 }
  0x19   : > { %p450_p11 = scmp.lt.s32.totalorder %s441_s3, %s441_s3 }
  0x1a   : > { %p444_p10 = pnand %p443_p9, %p442_p8 }
  0x1b   : > { %p451_p1 = por %p450_p11, %p449_p12 }
  0x1c   : > { %p445_p0 = pneg %p444_p10 }
  0x1e   : > { %p452_p4 = pnand %p451_p1, %p445_p0 }
  0x20   : > { %455 = shalt.err (!%p452_p4)
}
  0x21   : > { %s558_s4 = smov [#allocation6]   ;;  %s372_s5 = sshll.u32 %s556_s12, 9 }
  0x22   : > { %385 = dma.vmem_to_smem (!%p655_p7), %s111_s26, 16, %s558_s4, [#allocation5]  }
  0x23   : > { %s125_s6 = scalar_lea.vmem [#allocation2], %s357_s30  ;;  %s674_s16 = scalar_lea.hbm %s783_s0, %s372_s5 }
  0x24   : > { %s132_s7 = sshll.u32 %s125_s6, 4  ;;  %s678_s17 = scalar_lea.sflag [#allocation3], %s121_s28  ;;  %s676_s7 = int_to_ptr.vmem [resolvable:$true] %s132_s7 }
  0x25   : > { %s456_s19 = scalar_lea.hbm %s674_s16, 512  ;;  %p458_p5 = pneg %p662_p3 }
  0x26   : > { %p457_p4 = scmp.ne.s32.totalorder %s674_s16, %s456_s19  ;;  %s461_s26 = scalar_lea.hbm %s783_s0, 1024 }
  0x27   : > { %p462_p0 = scmp.lt.u32.totalorder %s674_s16, %s783_s0  ;;  %p463_p2 = scmp.lt.u32.totalorder %s461_s26, %s456_s19 }
  0x28   : > { %p459_p11 = pnand %p458_p5, %p457_p4  ;;  %p465_p8 = scmp.lt.u32.totalorder %s456_s19, %s674_s16 }
  0x29   : > { %p464_p7 = por %p463_p2, %p462_p0 }
  0x2a   : > { %p460_p12 = pneg %p459_p11 }
  0x2b   : > { %p466_p9 = por %p465_p8, %p464_p7 }
  0x2d   : > { %p467_p10 = pnand %p466_p9, %p460_p12 }
  0x2f   : > { %470 = shalt.err (!%p467_p10)
}
  0x30   : > { %s471_s28 = scalar_lea.vmem %s676_s7, 512  ;;  %s559_s3 = smov [#allocation2]  }
  0x31   : > { %p472_p1 = scmp.ne.s32.totalorder %s676_s7, %s471_s28  ;;  %s476_s4 = sshll.u32 %s559_s3, 4  ;;  %s477_s4 = int_to_ptr.vmem [resolvable:$false] %s476_s4 }
  0x32   : > { %s478_s5 = scalar_lea.vmem %s477_s4, 1024  ;;  %p479_p6 = scmp.lt.s32.totalorder %s676_s7, %s477_s4 }
  0x33   : > { %p474_p4 = pnand %p472_p1, %p458_p5  ;;  %p480_p0 = scmp.lt.s32.totalorder %s478_s5, %s471_s28 }
  0x35   : > { %p475_p11 = pneg %p474_p4  ;;  %p481_p2 = por %p480_p0, %p479_p6 }
  0x37   : > { %p482_p7 = pnand %p481_p2, %p475_p11 }
  0x39   : > { %485 = shalt.err (!%p482_p7)
}
  0x3a   : > { %s560_s6 = smov 256   ;;  %s561_s8 = smov 16  }
  0x3b   : > { %389 = dma.hbm_to_vmem [thread:$0]  (!%p662_p3), %s674_s16, 512, %s676_s7, %s678_s17, %s560_s6, %s560_s6, %s561_s8  }
  0x3c   : > { %144 = sbr.rel (%p642_p13) target bundleno = 514 (0x202), region = 28  ;;  %s709_s14 = sand.u32 (!%p642_p13), 1, %s548_s10  }
  0x3d   : > { %s361_s19 = sshll.u32 (!%p642_p13), %s709_s14, 5  ;;  %s147_s24 = scalar_lea.sflag (!%p642_p13), [#allocation3], %s709_s14 }
  0x3e   : > { %s150_s25 = scalar_lea.vmem (!%p642_p13), [#allocation2], %s361_s19  ;;  %p796_p6 = scmp.ne.s32.totalorder (!%p642_p13), %s790_s20, 0 }
  0x43   : > { %531 = dma.done.wait (%p796_p6), %s147_s24, 512  }
  0x44   : > { %533 = vsyncadd (%p796_p6), %s147_s24, 4294966784  ;;  %p797_p3 = scmp.eq.s32.totalorder %s603_s13, 0 }
  0x46   : > { %535 = dma.done.wait (%p797_p3), [#allocation5], 16   ;;  %p798_p13 = pmov %p797_p3 }
  0x48   : > { %537 = vsyncadd (%p798_p13), [#allocation5], 4294967280 }
  0x49   : > { %159 = sfence }
  0x4a   : > { %v723_v0 = vld [vmem:[%s150_s25] sm:$0xff]  ;;  %v725_v1 = vld [vmem:[%s150_s25 + $0x8] sm:$0xff]  ;;  %v178_v2 = vld [vmem:[%s150_s25 + $0x10] sm:$0xff]  ;;  %v190_v6 = vlaneseq  ;;  %s364_s20 = sld [smem:[#allocation6 + $0x1]]  ;;  %s365_s23 = sld [smem:[#allocation6 + $0x2]]  ;;  %vm202_vm0 = vcmask 138312  }
  0x4b   : > { %v180_v3 = vadd.f32 %v725_v1, %v723_v0  ;;  %v179_v4 = vld [vmem:[%s150_s25 + $0x18] sm:$0xff]  ;;  %vm205_vm1 = vcmask 7168   ;;  %vm207_vm2 = vcmask 138240   ;;  %s562_s29 = smov 127   ;;  %s563_s7 = smov 126  }
  0x4c   : > { %v183_v5 = vadd.f32 %v179_v4, %v178_v2  ;;  %v191_v7 = vand.u32 127, %v190_v6  ;;  %v194_v9 = vshrl.u32 %v190_v6, 7  ;;  %s209_s16 = sld [smem:[#allocation6]]  ;;  %s175_s17 = scalar_lea.vmem [#allocation7], %s361_s19 }
  0x4d   : > { %181 = vadd.xlane.f32.xlu0 %v180_v3  ;;  %s268_s26 = sshll.u32 %s175_s17, 4  ;;  %s373_s27 = sshll.u32 %s603_s13, 9  ;;  %s732_s26 = int_to_ptr.vmem [resolvable:$true] %s268_s26 }
  0x4e   : > { %v192_v8 = vadd.s32 4294967295, %v191_v7  ;;  %v197_v10 = vadd.s32 4294967287, %v191_v7  ;;  %v237_v35 = vsub.s32 0, %v194_v9  ;;  %s737_s3 = scalar_lea.hbm %s785_s2, %s373_s27  ;;  %s255_s13 = scalar_lea.sflag [#allocation4], %s709_s14 }
  0x4f   : > { %s486_s4 = scalar_lea.vmem %s732_s26, 512  ;;  %p799_p12 = scmp.ne.s32.totalorder %s791_s21, 0 }
  0x50   : > { %v195_v12 = vsub.s32 %v192_v8, %v194_v9  ;;  %v200_v14 = vsub.s32 %v197_v10, %v194_v9  ;;  %v214_v20 = vstv %s364_s20  ;;  %v222_v24 = vstv %s365_s23  ;;  %p487_p5 = scmp.ne.s32.totalorder %s732_s26, %s486_s4  ;;  %s564_s5 = smov [#allocation7]  }
  0x51   : > { %184 = vadd.xlane.f32.xlu0 %v183_v5  ;;  %s490_s6 = sshll.u32 %s564_s5, 4  ;;  %s491_s6 = int_to_ptr.vmem [resolvable:$false] %s490_s6 }
  0x52   : > { %v210_v26 = vstv %s209_s16  ;;  %p488_p8 = pnand %p487_p5, %p799_p12  ;;  %s492_s8 = scalar_lea.vmem %s491_s6, 1024 }
  0x53   : > { %p493_p10 = scmp.lt.s32.totalorder %s732_s26, %s491_s6  ;;  %p494_p1 = scmp.lt.s32.totalorder %s492_s8, %s486_s4 }
  0x54   : > { %p489_p9 = pneg %p488_p8 }
  0x55   : > { %p495_p4 = por %p494_p1, %p493_p10 }
  0x57   : > { %p496_p11 = pnand %p495_p4, %p489_p9 }
  0xda   : > { %v182_v11 = vpop.xlane.xlu0 %181 }
  0xdb   : > { %v186_v13 = vmul.f32 0.00390625, %v182_v11 }
  0xdd   : > { %v196_v17 = vrot.slane %v186_v13, %v195_v12 }
  0xde   : > { %v185_v15 = vpop.xlane.xlu0 %184 }
  0xdf   : > { %v187_v16 = vmul.f32 0.00390625, %v185_v15 }
  0xe1   : > { %v201_v18 = vrot.slane %v187_v16, %v200_v14 }
  0xe3   : > { %v203_v19 = vsel %vm202_vm0, %v201_v18, %v196_v17 }
  0xe4   : > { %v206_v21 = vsel %vm205_vm1, 0.0, %v203_v19 }
  0xe5   : > { %v208_v22 = vsel %vm207_vm2, %v206_v21, 0.0 }
  0xe6   : > { %v215_v23 = vmul.f32 %v214_v20, %v208_v22  ;;  %v223_v25 = vmul.f32 %v222_v24, %v208_v22  ;;  %v211_v28 = vmul.f32 %v210_v26, %v208_v22 }
  0xe8   : > { %217 = vrot.lane.b32.xlu1 %v215_v23, %s562_s29 }
  0xec   : > { %225 = vrot.lane.b32.xlu1 %v223_v25, %s563_s7 }
 0x15a   : > { %v218_v27 = vpop.permute.xlu1 %217 }
 0x15b   : > { %v220_v29 = vadd.f32 %v218_v27, %v211_v28 }
 0x15e   : > { %v226_v30 = vpop.permute.xlu1 %225 }
 0x15f   : > { %v228_v31 = vadd.f32 %v226_v30, %v220_v29 }
 0x161   : > { %v366_v32 = vmul.f32 -1.442695, %v228_v31 }
 0x163   : > { %437 = vpow2.f32 %v366_v32 }
 0x16d   : > { %v438_v33 = vpop.eup %437 }
 0x16e   : > { %v232_v34 = vadd.f32 1.0, %v438_v33 }
 0x170   : > { %439 = vrcp.f32 %v232_v34 }
 0x17a   : > { %v440_v36 = vpop.eup %439 }
 0x17b   : > { %v238_v37 = vrot.slane %v440_v36, %v237_v35 }
 0x17d   : > { %244 = vbcast.lane.b32.xlu1 %v238_v37, 264  ;;  %240 = vbcast.lane.b32.xlu0 %v238_v37, 256 }
 0x1ef   : > { %v245_v38 = vpop.permute.xlu1 %244  ;;  %v241_v39 = vpop.permute.xlu0 %240 }
 0x1f0   : > { %v248_v40 = vmul.f32 %v245_v38, %v178_v2  ;;  %v249_v41 = vmul.f32 %v245_v38, %v179_v4  ;;  %v246_v42 = vmul.f32 %v241_v39, %v723_v0  ;;  %v247_v43 = vmul.f32 %v241_v39, %v725_v1 }
 0x1f2   : > { %252 = vst [vmem:[%s175_s17 + $0x10] sm:$0xff] %v248_v40  ;;  %253 = vst [vmem:[%s175_s17 + $0x18] sm:$0xff] %v249_v41 }
 0x1f3   : > { %250 = vst [vmem:[%s175_s17] sm:$0xff] %v246_v42  ;;  %251 = vst [vmem:[%s175_s17 + $0x8] sm:$0xff] %v247_v43 }
 0x1f4   : > { %499 = shalt.err (!%p496_p11)
}
 0x1f5   : > { %s500_s19 = scalar_lea.hbm %s737_s3, 512  ;;  %s504_s20 = scalar_lea.hbm %s785_s2, 1024 }
 0x1f6   : > { %p501_p0 = scmp.ne.s32.totalorder %s737_s3, %s500_s19  ;;  %p505_p6 = scmp.lt.u32.totalorder %s737_s3, %s785_s2 }
 0x1f7   : > { %p506_p3 = scmp.lt.u32.totalorder %s504_s20, %s500_s19  ;;  %p508_p5 = scmp.lt.u32.totalorder %s500_s19, %s737_s3 }
 0x1f8   : > { %p502_p2 = pnand %p501_p0, %p799_p12 }
 0x1f9   : > { %p507_p13 = por %p506_p3, %p505_p6 }
 0x1fa   : > { %p503_p7 = pneg %p502_p2 }
 0x1fb   : > { %p509_p8 = por %p508_p5, %p507_p13 }
 0x1fd   : > { %p510_p9 = pnand %p509_p8, %p503_p7 }
 0x1ff   : > { %513 = shalt.err (!%p510_p9)
}
 0x200   : > { %s565_s7 = smov 256   ;;  %s566_s16 = smov 16  }
 0x201   : > { %380 = dma.vmem_to_hbm [thread:$0]  (%p799_p12), %s732_s26, 512, %s737_s3, %s255_s13, %s565_s7, %s565_s7, %s566_s16  }
 0x202 PF: > { %s283_s17 = sand.u32 1, %s544_s9   ;;  %p800_p10 = scmp.ne.s32.totalorder %s792_s22, 0 }
 0x203   : > { %p801_p1 = scmp.ge.s32.totalorder %s556_s12, 2  ;;  %s284_s27 = scalar_lea.sflag [#allocation4], %s283_s17 }
 0x205   : > { %p391_p4 = pnand %p801_p1, %p800_p10 }
 0x207   : > { %539 = dma.done.wait (!%p391_p4), %s284_s27, 512  }
 0x208   : > { %541 = vsyncadd (!%p391_p4), %s284_s27, 4294966784  ;;  %p16_p11 = scmp.ge.s32.totalorder %s607_s15, 4   ;;  %s802_s9 = smov %s548_s10 }
 0x209   : > { %s803_s10 = smov %s552_s11  ;;  %s804_s11 = smov %s619_s18 }
 0x20a   : > { %s805_s12 = smov %s607_s15  ;;  %18 = sbr.rel (!%p16_p11) target bundleno = 6 (0x6), region = 78 }
 0x211   :  { %289 = vsyncpa [#allocation3], 1 }
 0x212   :  { %291 = vsyncpa [#allocation3 + $0x1], 1 }
 0x213   :  { %292 = vsyncpa [#allocation4], 1 }
 0x214   :  { %294 = vsyncpa [#allocation4 + $0x1], 1 }
 0x215   :  { %295 = vsyncpa [#allocation5], 1 }
 0x216   :  { %297 = vsyncpa [#allocation5 + $0x1], 1 }

</bundles_post_ra>
